<compile_context>
chip_gen: v7x
topology: tpu7x:2x2x1
jax: 0.10.0
libtpu: 0.0.40
codegen_flags: <defaults>
</compile_context>

<pallas_src>
import math

import jax
import jax.numpy as jnp
from jax.experimental import pallas as pl
from jax.experimental.pallas import tpu as pltpu

# ---------------------------------------------------------------------------
# Hyper-parameters (small, consistent with the module)
# ---------------------------------------------------------------------------
B = 2            # batch
CIN = 4          # in_channels
OC = 4           # out_channels
H = W = 16       # spatial size
BIG = 7          # big_kernel
KS = 3           # small_kernel
STRIDE = 1
GROUP = 1
EPS = 1e-5

assert STRIDE == 1, "only stride=1 implemented"   # TODO(synk): strided conv/shifts
assert GROUP == 1, "only group=1 implemented"


def shift(kernels):
    """Verbatim port of LoRAConvsByWeight.shift."""
    mink, maxk = min(kernels), max(kernels)
    mid_p = maxk // 2
    offset_idx_left = mid_p % mink
    offset_idx_right = (math.ceil(maxk / mink) * mink - mid_p - 1) % mink
    padding = offset_idx_left % mink
    while padding < offset_idx_right:
        padding += mink
    while padding < mink - 1:
        padding += mink
    after_padding_index = padding - offset_idx_left
    index = math.ceil((mid_p + 1) / mink)
    real_start_idx = index - after_padding_index // mink
    return padding, after_padding_index, real_start_idx


NK = math.ceil(BIG / KS)
OUT_N = OC * NK
PADDING, AFTER_PAD_IDX, INDEX = shift((KS, BIG))

HP, WP = H + 2 * PADDING, W + 2 * PADDING                  # conv-padded input
HC = (H + 2 * PADDING - KS) // STRIDE + 1                  # conv output
WC = (W + 2 * PADDING - KS) // STRIDE + 1
ORI_P = BIG // 2
SUP_H = (H + 2 * ORI_P - BIG) // STRIDE + 1                # "suppose_len"
SUP_W = (W + 2 * ORI_P - BIG) // STRIDE + 1
CROP = PADDING - KS // 2                                    # center-crop amount
H1, W1 = HC - 2 * CROP, SUP_W                               # lora1 ('H') shape
H2, W2 = SUP_H, WC - 2 * CROP                               # lora2 ('W') shape
assert (H1, W1) == (H2, W2), "lora1/lora2 output shapes must match"
HF, WF = H1, W1
# unified shift offset per sub-kernel:  src = dst + OFFS[i]  (zeros outside)
OFFS = [(i + 1 - INDEX) * (KS // STRIDE) for i in range(NK)]
assert min(OFFS) >= 0          # TODO(synk): negative shifts (INDEX > 1) not folded
assert PADDING >= KS - 1       # guarantees truncated shift terms read only zero pad

# Extent of the folded "big" kernel (both branches fit in DY x DX taps).
DY = max(OFFS[-1] + KS, CROP + KS)
DX = DY
HPE = HF + DY - 1              # extended padded input height
WPE = WF + DX - 1              # extended padded input width
EXT_H = HPE - HP               # extra zero rows beyond the conv padding
EXT_W = WPE - WP
assert EXT_H >= 0 and EXT_W >= 0
assert CROP >= 0 and CROP + KS <= DY and OFFS[-1] + KS <= DX

K_RAW = DY * WPE * CIN         # contraction depth of the fused matmul
KPAD = (-K_RAW) % 128          # lane-pad K to a multiple of 128
K_DIM = K_RAW + KPAD
N_DIM = WF * 2 * OC            # lane-dense output: (w, branch, channel)
assert HF % 8 == 0 and N_DIM % 128 == 0


# ---------------------------------------------------------------------------
# Pallas kernel: one MXU matmul per batch.
#   lhs  = row-im2col patches           (HF, K_DIM)
#   rhs  = folded Toeplitz weights      (K_DIM, WF*2*OC)   (conv x mask x shifts)
#   out  = both LoRA pre-BN branches    (HF, 128)  lane-dense, single store
# ---------------------------------------------------------------------------
def lora_fused_kernel(xs_ref, r_ref, y_ref):
    y_ref[0] = jnp.dot(xs_ref[0], r_ref[...],
                       preferred_element_type=jnp.float32)


# ---------------------------------------------------------------------------
# Wrapper: layout plumbing (NCHW<->NHWC, im2col, weight folding) + BatchNorm
# statistics/affine + branch add, all left to XLA (tiny reductions / FMAs).
# ---------------------------------------------------------------------------
@jax.jit
def lora_convs_by_weight(x_nchw, conv_w, w1, w2, gamma1, beta1, gamma2, beta2):
    # NCHW -> NHWC, conv padding + zero extension for the folded shifts.
    x = jnp.transpose(x_nchw, (0, 2, 3, 1)).astype(jnp.float32)
    xpz = jnp.pad(x, ((0, 0),
                      (PADDING, PADDING + EXT_H),
                      (PADDING, PADDING + EXT_W),
                      (0, 0)))                               # (B, HPE, WPE, CIN)

    # --- fold conv weights + sigmoid gates + both shift-sums into T ----------
    # PyTorch conv weight (OUT_N, CIN, KS, KS), out index = c*NK + i.
    wk = conv_w.astype(jnp.float32).reshape(OC, NK, CIN, KS, KS)
    wk = jnp.transpose(wk, (1, 3, 4, 2, 0))                  # [i, ky, kx, cin, c]
    s1 = jax.nn.sigmoid(w1.astype(jnp.float32)).reshape(OC, NK).T   # [i, c]
    s2 = jax.nn.sigmoid(w2.astype(jnp.float32)).reshape(OC, NK).T

    T = jnp.zeros((2, DY, DX, CIN, OC), jnp.float32)         # [br, dy, dx, cin, c]
    for i in range(NK):
        # lora1 (VH='H'): crop rows by CROP, shift columns by OFFS[i]
        T = T.at[0, CROP:CROP + KS, OFFS[i]:OFFS[i] + KS].add(wk[i] * s1[i])
        # lora2 (VH='W'): shift rows by OFFS[i], crop columns by CROP
        T = T.at[1, OFFS[i]:OFFS[i] + KS, CROP:CROP + KS].add(wk[i] * s2[i])

    # --- Toeplitz rhs: R[dy, x, cin, w, br, c] = T[br, dy, x - w, cin, c] ----
    Tt = jnp.transpose(T, (1, 2, 3, 0, 4))                   # [dy, dx, cin, br, c]
    R6 = jnp.stack(
        [jnp.pad(Tt, ((0, 0), (w, WPE - DX - w), (0, 0), (0, 0), (0, 0)))
         for w in range(WF)],
        axis=3)                                              # [dy, x, cin, w, br, c]
    R = R6.reshape(K_RAW, N_DIM)
    R = jnp.pad(R, ((0, KPAD), (0, 0)))                      # (K_DIM, 128)

    # --- row-im2col lhs: xs[b, h, dy*WPE*CIN + x*CIN + cin] = xpz[b, h+dy, x, cin]
    xs = jnp.stack([xpz[:, dy:dy + HF] for dy in range(DY)], axis=2)
    xs = xs.reshape(B, HF, K_RAW)
    xs = jnp.pad(xs, ((0, 0), (0, 0), (0, KPAD)))            # (B, HF, K_DIM)

    # --- fused conv + mask + shift-sum kernel --------------------------------
    y = pl.pallas_call(
        lora_fused_kernel,
        out_shape=jax.ShapeDtypeStruct((B, HF, N_DIM), jnp.float32),
        grid_spec=pltpu.PrefetchScalarGridSpec(
            num_scalar_prefetch=0,
            grid=(B,),
            in_specs=[
                pl.BlockSpec((1, HF, K_DIM), lambda b: (b, 0, 0)),
                pl.BlockSpec((K_DIM, N_DIM), lambda b: (0, 0)),
            ],
            out_specs=pl.BlockSpec((1, HF, N_DIM), lambda b: (b, 0, 0)),
        ),
        # No cross-step state -> batch axis is parallel (megacore on v7x).
        compiler_params=pltpu.CompilerParams(dimension_semantics=("parallel",)),
    )(xs, R)

    # --- BatchNorm (training-mode batch stats) + branch add + NCHW -----------
    yr = y.reshape(B, HF, WF, 2, OC)
    out1 = yr[..., 0, :]
    out2 = yr[..., 1, :]
    mean1 = jnp.mean(out1, axis=(0, 1, 2))
    var1 = jnp.var(out1, axis=(0, 1, 2))
    mean2 = jnp.mean(out2, axis=(0, 1, 2))
    var2 = jnp.var(out2, axis=(0, 1, 2))
    l1 = (out1 - mean1) * (gamma1 / jnp.sqrt(var1 + EPS)) + beta1
    l2 = (out2 - mean2) * (gamma2 / jnp.sqrt(var2 + EPS)) + beta2
    return jnp.transpose(l1 + l2, (0, 3, 1, 2))              # NCHW


# ---------------------------------------------------------------------------
# Pure-JAX reference (literal port of the PyTorch forward) for validation
# ---------------------------------------------------------------------------
def _ref_rearrange(x, idx, ori_h, ori_w, vh):
    b, c, h, w = x.shape
    k, ori_k = KS, BIG
    ori_p = ori_k // 2
    if idx + 1 >= INDEX:
        pad_l, s = 0, (idx + 1 - INDEX) * (k // STRIDE)
    else:
        pad_l, s = (INDEX - 1 - idx) * (k // STRIDE), 0
    if vh == 'H':
        suppose_len = (ori_w + 2 * ori_p - ori_k) // STRIDE + 1
        pad_r = 0 if s + suppose_len <= w + pad_l else s + suppose_len - w - pad_l
        x = jnp.pad(x, ((0, 0), (0, 0), (0, 0), (pad_l, pad_r)))
        dim = 3
    else:
        suppose_len = (ori_h + 2 * ori_p - ori_k) // STRIDE + 1
        pad_r = 0 if s + suppose_len <= h + pad_l else s + suppose_len - h - pad_l
        x = jnp.pad(x, ((0, 0), (0, 0), (pad_l, pad_r), (0, 0)))
        dim = 2
    if PADDING * 2 + 1 != k:
        pp = PADDING - k // 2
        if vh == 'H':
            x = x[:, :, pp:pp + (h - 2 * pp), :]
        else:
            x = x[:, :, :, pp:pp + (w - 2 * pp)]
    if dim == 3:
        return x[:, :, :, s:s + suppose_len]
    return x[:, :, s:s + suppose_len, :]


def _ref_bn(x, gamma, beta):
    mean = jnp.mean(x, axis=(0, 2, 3), keepdims=True)
    var = jnp.mean((x - mean) ** 2, axis=(0, 2, 3), keepdims=True)
    return (x - mean) / jnp.sqrt(var + EPS) * gamma.reshape(1, -1, 1, 1) \
        + beta.reshape(1, -1, 1, 1)


def _ref_forward_lora(out, ori_h, ori_w, vh, gamma, beta):
    b, c, h, w = out.shape
    out = out.reshape(b, OC, NK, h, w)
    x = 0
    for i in range(NK):
        x = x + _ref_rearrange(out[:, :, i], i, ori_h, ori_w, vh)
    return _ref_bn(x, gamma, beta)


def reference_forward(x, conv_w, w1, w2, gamma1, beta1, gamma2, beta2):
    out = jax.lax.conv_general_dilated(
        x, conv_w, window_strides=(STRIDE, STRIDE),
        padding=[(PADDING, PADDING), (PADDING, PADDING)],
        dimension_numbers=('NCHW', 'OIHW', 'NCHW'),
        precision=jax.lax.Precision.HIGHEST)
    m1 = jax.nn.sigmoid(w1)
    m2 = jax.nn.sigmoid(w2)
    l1 = _ref_forward_lora(out * m1, x.shape[2], x.shape[3], 'H', gamma1, beta1)
    l2 = _ref_forward_lora(out * m2, x.shape[2], x.shape[3], 'W', gamma2, beta2)
    return l1 + l2


# ---------------------------------------------------------------------------
if __name__ == "__main__":
    key = jax.random.PRNGKey(0)
    ks = jax.random.split(key, 8)
    x = jax.random.normal(ks[0], (B, CIN, H, W), jnp.float32)
    conv_w = jax.random.normal(ks[1], (OUT_N, CIN, KS, KS), jnp.float32) / math.sqrt(CIN * KS * KS)
    w1 = jax.random.uniform(ks[2], (1, OUT_N, 1, 1), jnp.float32, minval=-1.0, maxval=1.0)
    w2 = jax.random.uniform(ks[3], (1, OUT_N, 1, 1), jnp.float32, minval=-1.0, maxval=1.0)
    gamma1 = 1.0 + 0.1 * jax.random.normal(ks[4], (OC,), jnp.float32)
    beta1 = 0.1 * jax.random.normal(ks[5], (OC,), jnp.float32)
    gamma2 = 1.0 + 0.1 * jax.random.normal(ks[6], (OC,), jnp.float32)
    beta2 = 0.1 * jax.random.normal(ks[7], (OC,), jnp.float32)

    y = lora_convs_by_weight(x, conv_w, w1, w2, gamma1, beta1, gamma2, beta2)
    y = jax.block_until_ready(y)
    assert y.shape == (B, OC, HF, WF)

    y_ref = reference_forward(x, conv_w, w1, w2, gamma1, beta1, gamma2, beta2)
    if not jnp.allclose(y, y_ref, atol=2e-3, rtol=2e-3):
        raise AssertionError(
            f"mismatch vs reference, max abs err = {float(jnp.max(jnp.abs(y - y_ref)))}")

    print("KERNEL_OK")
</pallas_src>

<mosaic_0001>
module attributes {stable_mosaic.version = 11 : i64} {
  func.func @lora_fused_kernel(%arg0: i32, %arg1: memref<1x16x896xf32, #tpu.memory_space<vmem>>, %arg2: memref<896x128xf32, #tpu.memory_space<vmem>>, %arg3: memref<1x16x128xf32, #tpu.memory_space<vmem>>) attributes {dimension_semantics = [#tpu.dimension_semantics<parallel>], iteration_bounds = array<i64: 2>, scalar_prefetch = 0 : i64, scratch_operands = 0 : i64, tpu.core_type = #tpu.core_type<tc>, window_params = [{transform_indices = @transform_0, window_bounds = array<i64: 1, 16, 896>}, {pipeline_mode = #tpu.pipeline_mode<synchronous>, transform_indices = @transform_1, window_bounds = array<i64: 896, 128>}, {transform_indices = @transform_2, window_bounds = array<i64: 1, 16, 128>}]} {
    %c0 = arith.constant 0 : index
    %c0_0 = arith.constant 0 : index
    %c0_1 = arith.constant 0 : index
    %0 = vector.load %arg1[%c0, %c0_0, %c0_1] : memref<1x16x896xf32, #tpu.memory_space<vmem>>, vector<1x16x896xf32>
    %1 = vector.shape_cast %0 : vector<1x16x896xf32> to vector<16x896xf32>
    %c0_2 = arith.constant 0 : index
    %c0_3 = arith.constant 0 : index
    %2 = vector.load %arg2[%c0_2, %c0_3] : memref<896x128xf32, #tpu.memory_space<vmem>>, vector<896x128xf32>
    %cst = arith.constant dense<0.000000e+00> : vector<16x128xf32>
    %3 = tpu.matmul %1, %2, %cst {dimension_numbers = #tpu.dot_dimension_numbers<[1], [0], [0], [1], [0, 0, 1, 1], [], []>} : vector<16x896xf32>, vector<896x128xf32>, vector<16x128xf32> -> vector<16x128xf32>
    %c0_4 = arith.constant 0 : index
    %c0_5 = arith.constant 0 : index
    %c0_6 = arith.constant 0 : index
    %4 = vector.load %arg3[%c0_4, %c0_5, %c0_6] : memref<1x16x128xf32, #tpu.memory_space<vmem>>, vector<1x16x128xf32>
    %5 = vector.shape_cast %4 : vector<1x16x128xf32> to vector<16x128xf32>
    %6 = vector.shape_cast %3 : vector<16x128xf32> to vector<1x16x128xf32>
    tpu.vector_store %arg3[%c0_4, %c0_5, %c0_6], %6 {strides = array<i32>} : memref<1x16x128xf32, #tpu.memory_space<vmem>>, vector<1x16x128xf32>,
    return
  }
  func.func @transform_0(%arg0: i32) -> (i32, i32, i32) {
    %c0_i32 = arith.constant 0 : i32
    %c0_i32_0 = arith.constant 0 : i32
    %c0_i32_1 = arith.constant 0 : i32
    return %arg0, %c0_i32, %c0_i32_0 : i32, i32, i32
  }
  func.func @transform_1(%arg0: i32) -> (i32, i32) {
    %c0_i32 = arith.constant 0 : i32
    %c0_i32_0 = arith.constant 0 : i32
    %c0_i32_1 = arith.constant 0 : i32
    return %c0_i32, %c0_i32_0 : i32, i32
  }
  func.func @transform_2(%arg0: i32) -> (i32, i32, i32) {
    %c0_i32 = arith.constant 0 : i32
    %c0_i32_0 = arith.constant 0 : i32
    %c0_i32_1 = arith.constant 0 : i32
    return %arg0, %c0_i32, %c0_i32_0 : i32, i32, i32
  }
}

</mosaic_0001>

<bundles_post_ra>
// kernel: lora_convs_by_weight.1
= control target key start
LH: loop header
LB: loop body
LE: loop exit
PB: predicated region body
PF: predicated region fallthrough
CT: control target
= control target key end

     0   :  { %s965_s9 = smov 0   ;;  %s1348_s0 = inlined_call_operand.vmem [shape: f32[2,16,896], index: 0, kind: input, shape index: {}]   ;;  %s1349_s1 = inlined_call_operand.vmem [shape: f32[896,128], index: 1, kind: input, shape index: {}]   ;;  %s1350_s2 = inlined_call_operand.vmem [shape: f32[2,16,128], index: 2, kind: output, shape index: {}]  }
   0x1 LB: > { %s627_s10 = sadd.s32 4294967295, %s948_s9   ;;  %p631_p0 = scmp.ge.s32.totalorder %s948_s9, 1  ;;  %s948_s9 = sphi %s965_s9, %s12_s9  }
   0x2   : > { %p112_p1 = scmp.lt.s32.totalorder %s948_s9, 3 }
   0x4   : > { %p113_p2 = pnand %p631_p0, %p112_p1 }
   0x5   : > { %v174_v0 = vld [vmem:[%s1349_s1 + $0x80] sm:$0xff] (!%p113_p2)  ;;  %v175_v1 = vld [vmem:[%s1349_s1 + $0x88] sm:$0xff] (!%p113_p2)  ;;  %v176_v11 = vld [vmem:[%s1349_s1 + $0x90] sm:$0xff] (!%p113_p2)  ;;  %p1038_p3 = scmp.lt.s32.totalorder (!%p113_p2), %s627_s10, 1 }
   0x6   : > { %116 = sbr.rel (%p113_p2) target bundleno = 297 (0x129), region = 28  ;;  %v206_v2 = vld [vmem:[%s1349_s1 + $0x180] sm:$0xff] (!%p113_p2)  ;;  %v805_v3 = vpack.c.bf16 (!%p113_p2), %v175_v1, %v174_v0  ;;  %v207_v4 = vld [vmem:[%s1349_s1 + $0x188] sm:$0xff] (!%p113_p2)  ;;  %v177_v13 = vld [vmem:[%s1349_s1 + $0x98] sm:$0xff] (!%p113_p2) }
   0x7   : > { %v158_v5 = vld [vmem:[%s1349_s1] sm:$0xff] (!%p113_p2)  ;;  %v159_v6 = vld [vmem:[%s1349_s1 + $0x8] sm:$0xff] (!%p113_p2)  ;;  %v837_v7 = vpack.c.bf16 (!%p113_p2), %v207_v4, %v206_v2  ;;  %v208_v14 = vld [vmem:[%s1349_s1 + $0x190] sm:$0xff] (!%p113_p2)  ;;  %v809_v16 = vpack.c.bf16 (!%p113_p2), %v177_v13, %v176_v11 }
   0x8   : > { %v807_v8 = vpack.c.bf16 (!%p113_p2), %v159_v6, %v158_v5  ;;  %v190_v9 = vld [vmem:[%s1349_s1 + $0x100] sm:$0xff] (!%p113_p2)  ;;  %v191_v10 = vld [vmem:[%s1349_s1 + $0x108] sm:$0xff] (!%p113_p2)  ;;  %806 = vmatprep.subr.bf16.mxu0 (!%p113_p2), %v805_v3  ;;  %v209_v15 = vld [vmem:[%s1349_s1 + $0x198] sm:$0xff] (!%p113_p2) }
   0x9   : > { %v839_v12 = vpack.c.bf16 (!%p113_p2), %v191_v10, %v190_v9  ;;  %838 = vmatprep.subr.bf16.mxu1 (!%p113_p2), %v837_v7  ;;  %v841_v17 = vpack.c.bf16 (!%p113_p2), %v209_v15, %v208_v14  ;;  %v160_v18 = vld [vmem:[%s1349_s1 + $0x10] sm:$0xff] (!%p113_p2)  ;;  %v161_v19 = vld [vmem:[%s1349_s1 + $0x18] sm:$0xff] (!%p113_p2)  ;;  %v178_v23 = vld [vmem:[%s1349_s1 + $0xa0] sm:$0xff] (!%p113_p2) }
   0xa   : > { %808 = vmatpush3.bf16.msra.mxu0 (!%p113_p2), %v807_v8  ;;  %v192_v20 = vld [vmem:[%s1349_s1 + $0x110] sm:$0xff] (!%p113_p2)  ;;  %v811_v21 = vpack.c.bf16 (!%p113_p2), %v161_v19, %v160_v18  ;;  %v193_v22 = vld [vmem:[%s1349_s1 + $0x118] sm:$0xff] (!%p113_p2)  ;;  %v179_v24 = vld [vmem:[%s1349_s1 + $0xa8] sm:$0xff] (!%p113_p2) }
   0xb   : > { %840 = vmatpush3.bf16.msra.mxu1 (!%p113_p2), %v839_v12  ;;  %810 = vmatprep.subr.bf16.mxu0 (!%p113_p2), %v809_v16  ;;  %v843_v25 = vpack.c.bf16 (!%p113_p2), %v193_v22, %v192_v20  ;;  %v813_v26 = vpack.c.bf16 (!%p113_p2), %v179_v24, %v178_v23  ;;  %v210_v27 = vld [vmem:[%s1349_s1 + $0x1a0] sm:$0xff] (!%p113_p2)  ;;  %v211_v28 = vld [vmem:[%s1349_s1 + $0x1a8] sm:$0xff] (!%p113_p2)  ;;  %v180_v35 = vld [vmem:[%s1349_s1 + $0xb0] sm:$0xff] (!%p113_p2) }
   0xc   : > { %842 = vmatprep.subr.bf16.mxu1 (!%p113_p2), %v841_v17  ;;  %v162_v29 = vld [vmem:[%s1349_s1 + $0x20] sm:$0xff] (!%p113_p2)  ;;  %v845_v30 = vpack.c.bf16 (!%p113_p2), %v211_v28, %v210_v27  ;;  %v163_v31 = vld [vmem:[%s1349_s1 + $0x28] sm:$0xff] (!%p113_p2)  ;;  %v181_v36 = vld [vmem:[%s1349_s1 + $0xb8] sm:$0xff] (!%p113_p2) }
   0xd   : > { %v194_v32 = vld [vmem:[%s1349_s1 + $0x120] sm:$0xff]  ;;  %v195_v33 = vld [vmem:[%s1349_s1 + $0x128] sm:$0xff]  ;;  %v815_v34 = vpack.c.bf16 %v163_v31, %v162_v29  ;;  %v212_v37 = vld [vmem:[%s1349_s1 + $0x1b0] sm:$0xff]  ;;  %v817_v39 = vpack.c.bf16 %v181_v36, %v180_v35  ;;  %s1353_s10 = smov (!%p1038_p3, %s627_s10), 1 }
   0xe   : > { %812 = vmatpush3.bf16.msra.mxu0 %v811_v21  ;;  %v847_v38 = vpack.c.bf16 %v195_v33, %v194_v32  ;;  %v213_v40 = vld [vmem:[%s1349_s1 + $0x1b8] sm:$0xff]  ;;  %v164_v41 = vld [vmem:[%s1349_s1 + $0x30] sm:$0xff]  ;;  %v182_v46 = vld [vmem:[%s1349_s1 + $0xc0] sm:$0xff]  ;;  %s933_s18 = smul.u32 112, %s1353_s10 }
   0xf   : > { %844 = vmatpush3.bf16.msra.mxu1 %v843_v25  ;;  %814 = vmatprep.subr.bf16.mxu0 %v813_v26  ;;  %v165_v42 = vld [vmem:[%s1349_s1 + $0x38] sm:$0xff]  ;;  %v849_v43 = vpack.c.bf16 %v213_v40, %v212_v37  ;;  %v196_v44 = vld [vmem:[%s1349_s1 + $0x130] sm:$0xff]  ;;  %v183_v47 = vld [vmem:[%s1349_s1 + $0xc8] sm:$0xff] }
  0x10   : > { %846 = vmatprep.subr.bf16.mxu1 %v845_v30  ;;  %v197_v45 = vld [vmem:[%s1349_s1 + $0x138] sm:$0xff]  ;;  %v214_v48 = vld [vmem:[%s1349_s1 + $0x1c0] sm:$0xff]  ;;  %v215_v49 = vld [vmem:[%s1349_s1 + $0x1c8] sm:$0xff]  ;;  %v819_v50 = vpack.c.bf16 %v165_v42, %v164_v41  ;;  %v821_v52 = vpack.c.bf16 %v183_v47, %v182_v46  ;;  %s1139_s11 = scalar_lea.vmem %s1348_s0, %s933_s18 }
  0x11   : > { %v851_v51 = vpack.c.bf16 %v197_v45, %v196_v44  ;;  %v166_v53 = vld [vmem:[%s1349_s1 + $0x40] sm:$0xff]  ;;  %v167_v54 = vld [vmem:[%s1349_s1 + $0x48] sm:$0xff]  ;;  %v853_v56 = vpack.c.bf16 %v215_v49, %v214_v48  ;;  %v184_v58 = vld [vmem:[%s1349_s1 + $0xd0] sm:$0xff] }
  0x12   : > { %816 = vmatpush3.bf16.msra.mxu0 %v815_v34  ;;  %v198_v55 = vld [vmem:[%s1349_s1 + $0x140] sm:$0xff]  ;;  %v199_v57 = vld [vmem:[%s1349_s1 + $0x148] sm:$0xff]  ;;  %v185_v59 = vld [vmem:[%s1349_s1 + $0xd8] sm:$0xff]  ;;  %v823_v62 = vpack.c.bf16 %v167_v54, %v166_v53 }
  0x13   : > { %848 = vmatpush3.bf16.msra.mxu1 %v847_v38  ;;  %818 = vmatprep.subr.bf16.mxu0 %v817_v39  ;;  %v216_v60 = vld [vmem:[%s1349_s1 + $0x1d0] sm:$0xff]  ;;  %v217_v61 = vld [vmem:[%s1349_s1 + $0x1d8] sm:$0xff]  ;;  %v855_v63 = vpack.c.bf16 %v199_v57, %v198_v55  ;;  %v825_v0 = vpack.c.bf16 %v185_v59, %v184_v58  ;;  %v186_v6 = vld [vmem:[%s1349_s1 + $0xe0] sm:$0xff] }
  0x14   : > { %850 = vmatprep.subr.bf16.mxu1 %v849_v43  ;;  %v168_v1 = vld [vmem:[%s1349_s1 + $0x50] sm:$0xff]  ;;  %v169_v2 = vld [vmem:[%s1349_s1 + $0x58] sm:$0xff]  ;;  %v857_v4 = vpack.c.bf16 %v217_v61, %v216_v60  ;;  %v187_v7 = vld [vmem:[%s1349_s1 + $0xe8] sm:$0xff] }
  0x15   : > { %v200_v3 = vld [vmem:[%s1349_s1 + $0x150] sm:$0xff]  ;;  %v201_v5 = vld [vmem:[%s1349_s1 + $0x158] sm:$0xff]  ;;  %v218_v8 = vld [vmem:[%s1349_s1 + $0x1e0] sm:$0xff]  ;;  %v827_v10 = vpack.c.bf16 %v169_v2, %v168_v1  ;;  %v829_v14 = vpack.c.bf16 %v187_v7, %v186_v6 }
  0x16   : > { %820 = vmatpush3.bf16.msra.mxu0 %v819_v50  ;;  %v219_v9 = vld [vmem:[%s1349_s1 + $0x1e8] sm:$0xff]  ;;  %v170_v11 = vld [vmem:[%s1349_s1 + $0x60] sm:$0xff]  ;;  %v859_v13 = vpack.c.bf16 %v201_v5, %v200_v3  ;;  %v147_v17 = vld [vmem:[%s1139_s11 + $0x18] sm:$0xff] }
  0x17   : > { %852 = vmatpush3.bf16.msra.mxu1 %v851_v51  ;;  %822 = vmatprep.subr.bf16.mxu0 %v821_v52  ;;  %v171_v12 = vld [vmem:[%s1349_s1 + $0x68] sm:$0xff]  ;;  %v202_v15 = vld [vmem:[%s1349_s1 + $0x160] sm:$0xff]  ;;  %v861_v18 = vpack.c.bf16 %v219_v9, %v218_v8  ;;  %v188_v20 = vld [vmem:[%s1349_s1 + $0xf0] sm:$0xff] }
  0x18   : > { %854 = vmatprep.subr.bf16.mxu1 %v853_v56  ;;  %v145_v16 = vld [vmem:[%s1139_s11 + $0x8] sm:$0xff]  ;;  %v189_v21 = vld [vmem:[%s1349_s1 + $0xf8] sm:$0xff]  ;;  %v220_v22 = vld [vmem:[%s1349_s1 + $0x1f0] sm:$0xff]  ;;  %409 = vmatprep.mubr.f32.mxu1 %v147_v17  ;;  %v831_v24 = vpack.c.bf16 %v171_v12, %v170_v11 }
  0x19   : > { %v203_v19 = vld [vmem:[%s1349_s1 + $0x168] sm:$0xff]  ;;  %334 = vmatprep.mubr.f32.mxu0 %v145_v16  ;;  %v221_v23 = vld [vmem:[%s1349_s1 + $0x1f8] sm:$0xff]  ;;  %v833_v26 = vpack.c.bf16 %v189_v21, %v188_v20  ;;  %v172_v27 = vld [vmem:[%s1349_s1 + $0x70] sm:$0xff] }
  0x1a   : > { %824 = vmatpush3.bf16.msra.mxu0 %v823_v62  ;;  %v863_v25 = vpack.c.bf16 %v203_v19, %v202_v15  ;;  %v173_v28 = vld [vmem:[%s1349_s1 + $0x78] sm:$0xff]  ;;  %v204_v29 = vld [vmem:[%s1349_s1 + $0x170] sm:$0xff]  ;;  %v865_v30 = vpack.c.bf16 %v221_v23, %v220_v22  ;;  %v238_v32 = vld [vmem:[%s1349_s1 + $0x280] sm:$0xff] }
  0x1b   : > { %856 = vmatpush3.bf16.msra.mxu1 %v855_v63  ;;  %826 = vmatprep.subr.bf16.mxu0 %v825_v0  ;;  %v205_v31 = vld [vmem:[%s1349_s1 + $0x178] sm:$0xff]  ;;  %v239_v33 = vld [vmem:[%s1349_s1 + $0x288] sm:$0xff]  ;;  %v254_v34 = vld [vmem:[%s1349_s1 + $0x300] sm:$0xff]  ;;  %v835_v36 = vpack.c.bf16 %v173_v28, %v172_v27 }
  0x1c   : > { %858 = vmatprep.subr.bf16.mxu1 %v857_v4  ;;  %v255_v35 = vld [vmem:[%s1349_s1 + $0x308] sm:$0xff]  ;;  %v867_v37 = vpack.c.bf16 %v205_v31, %v204_v29  ;;  %v869_v38 = vpack.c.bf16 %v239_v33, %v238_v32  ;;  %v222_v39 = vld [vmem:[%s1349_s1 + $0x200] sm:$0xff]  ;;  %v240_v41 = vld [vmem:[%s1349_s1 + $0x290] sm:$0xff] }
  0x1d   : > { %v223_v40 = vld [vmem:[%s1349_s1 + $0x208] sm:$0xff]  ;;  %v241_v42 = vld [vmem:[%s1349_s1 + $0x298] sm:$0xff]  ;;  %v901_v43 = vpack.c.bf16 %v255_v35, %v254_v34  ;;  %v256_v44 = vld [vmem:[%s1349_s1 + $0x310] sm:$0xff] }
  0x1e   : > { %828 = vmatpush3.bf16.msra.mxu0 %v827_v10  ;;  %v257_v45 = vld [vmem:[%s1349_s1 + $0x318] sm:$0xff]  ;;  %v144_v46 = vld [vmem:[%s1139_s11] sm:$0xff]  ;;  %v871_v47 = vpack.c.bf16 %v223_v40, %v222_v39  ;;  %v146_v48 = vld [vmem:[%s1139_s11 + $0x10] sm:$0xff]  ;;  %v873_v49 = vpack.c.bf16 %v241_v42, %v240_v41 }
  0x1f   : > { %860 = vmatpush3.bf16.msra.mxu1 %v859_v13  ;;  %830 = vmatprep.subr.bf16.mxu0 %v829_v14  ;;  %v224_v50 = vld [vmem:[%s1349_s1 + $0x210] sm:$0xff]  ;;  %v225_v51 = vld [vmem:[%s1349_s1 + $0x218] sm:$0xff]  ;;  %v242_v52 = vld [vmem:[%s1349_s1 + $0x2a0] sm:$0xff]  ;;  %v905_v54 = vpack.c.bf16 %v257_v45, %v256_v44 }
  0x20   : > { %862 = vmatprep.subr.bf16.mxu1 %v861_v18  ;;  %v243_v53 = vld [vmem:[%s1349_s1 + $0x2a8] sm:$0xff]  ;;  %v258_v55 = vld [vmem:[%s1349_s1 + $0x320] sm:$0xff]  ;;  %v875_v57 = vpack.c.bf16 %v225_v51, %v224_v50  ;;  %v154_v59 = vld [vmem:[%s1139_s11 + $0x50] sm:$0xff] }
  0x21   : > { %v259_v56 = vld [vmem:[%s1349_s1 + $0x328] sm:$0xff]  ;;  %v152_v58 = vld [vmem:[%s1139_s11 + $0x40] sm:$0xff]  ;;  %v151_v60 = vld [vmem:[%s1139_s11 + $0x38] sm:$0xff]  ;;  %v877_v61 = vpack.c.bf16 %v243_v53, %v242_v52 }
  0x22   : > { %832 = vmatpush3.bf16.msra.mxu0 %v831_v24  ;;  %v226_v62 = vld [vmem:[%s1349_s1 + $0x220] sm:$0xff]  ;;  %v227_v63 = vld [vmem:[%s1349_s1 + $0x228] sm:$0xff]  ;;  %v244_v1 = vld [vmem:[%s1349_s1 + $0x2b0] sm:$0xff]  ;;  %v909_v3 = vpack.c.bf16 %v259_v56, %v258_v55 }
  0x23   : > { %864 = vmatpush3.bf16.msra.mxu1 %v863_v25  ;;  %834 = vmatprep.subr.bf16.mxu0 %v833_v26  ;;  %v153_v0 = vld [vmem:[%s1139_s11 + $0x48] sm:$0xff]  ;;  %v245_v2 = vld [vmem:[%s1349_s1 + $0x2b8] sm:$0xff]  ;;  %v260_v4 = vld [vmem:[%s1349_s1 + $0x330] sm:$0xff]  ;;  %v879_v7 = vpack.c.bf16 %v227_v63, %v226_v62 }
  0x24   : > { %866 = vmatprep.subr.bf16.mxu1 %v865_v30  ;;  %v261_v5 = vld [vmem:[%s1349_s1 + $0x338] sm:$0xff]  ;;  %v149_v6 = vld [vmem:[%s1139_s11 + $0x28] sm:$0xff]  ;;  %v881_v8 = vpack.c.bf16 %v245_v2, %v244_v1  ;;  %v228_v9 = vld [vmem:[%s1349_s1 + $0x230] sm:$0xff] }
  0x25   : > { %v229_v10 = vld [vmem:[%s1349_s1 + $0x238] sm:$0xff]  ;;  %v150_v11 = vld [vmem:[%s1139_s11 + $0x30] sm:$0xff]  ;;  %v246_v12 = vld [vmem:[%s1349_s1 + $0x2c0] sm:$0xff]  ;;  %v913_v14 = vpack.c.bf16 %v261_v5, %v260_v4 }
  0x26   : > { %836 = vmatpush3.bf16.msra.mxu0 %v835_v36  ;;  %v247_v13 = vld [vmem:[%s1349_s1 + $0x2c8] sm:$0xff]  ;;  %v262_v15 = vld [vmem:[%s1349_s1 + $0x340] sm:$0xff]  ;;  %v883_v17 = vpack.c.bf16 %v229_v10, %v228_v9  ;;  %v248_v21 = vld [vmem:[%s1349_s1 + $0x2d0] sm:$0xff] }
  0x27   : > { %868 = vmatpush3.bf16.msra.mxu1 %v867_v37  ;;  %870 = vmatprep.subr.bf16.mxu0 %v869_v38  ;;  %v263_v16 = vld [vmem:[%s1349_s1 + $0x348] sm:$0xff]  ;;  %v885_v18 = vpack.c.bf16 %v247_v13, %v246_v12  ;;  %v230_v19 = vld [vmem:[%s1349_s1 + $0x240] sm:$0xff]  ;;  %v249_v22 = vld [vmem:[%s1349_s1 + $0x2d8] sm:$0xff] }
  0x28   : > { %902 = vmatprep.subr.bf16.mxu1 %v901_v43  ;;  %v231_v20 = vld [vmem:[%s1349_s1 + $0x248] sm:$0xff]  ;;  %v917_v23 = vpack.c.bf16 %v263_v16, %v262_v15  ;;  %v264_v24 = vld [vmem:[%s1349_s1 + $0x350] sm:$0xff]  ;;  %v265_v25 = vld [vmem:[%s1349_s1 + $0x358] sm:$0xff]  ;;  %v889_v27 = vpack.c.bf16 %v249_v22, %v248_v21 }
  0x29   : > { %335 = vmatmul.mubr.f32.vlgmr.msra.gmra.mrb[0].mxu0 %v144_v46  ;;  %v887_v26 = vpack.c.bf16 %v231_v20, %v230_v19  ;;  %v232_v28 = vld [vmem:[%s1349_s1 + $0x250] sm:$0xff]  ;;  %v233_v29 = vld [vmem:[%s1349_s1 + $0x258] sm:$0xff]  ;;  %v250_v30 = vld [vmem:[%s1349_s1 + $0x2e0] sm:$0xff]  ;;  %v921_v32 = vpack.c.bf16 %v265_v25, %v264_v24 }
  0x2a   : > { %410 = vmatmul.mubr.f32.vlgmr.msra.gmra.mrb[0].mxu1 %v146_v48  ;;  %872 = vmatpush3.bf16.msra.mxu0 %v871_v47  ;;  %v251_v31 = vld [vmem:[%s1349_s1 + $0x2e8] sm:$0xff]  ;;  %v266_v33 = vld [vmem:[%s1349_s1 + $0x360] sm:$0xff]  ;;  %v891_v35 = vpack.c.bf16 %v233_v29, %v232_v28  ;;  %v252_v39 = vld [vmem:[%s1349_s1 + $0x2f0] sm:$0xff] }
  0x2b   : > { %874 = vmatprep.subr.bf16.mxu0 %v873_v49  ;;  %904 = vmatpush3.bf16.msra.mxu1 %v901_v43  ;;  %v267_v34 = vld [vmem:[%s1349_s1 + $0x368] sm:$0xff]  ;;  %v893_v36 = vpack.c.bf16 %v251_v31, %v250_v30  ;;  %v234_v37 = vld [vmem:[%s1349_s1 + $0x260] sm:$0xff]  ;;  %v253_v40 = vld [vmem:[%s1349_s1 + $0x2f8] sm:$0xff] }
  0x2c   : > { %906 = vmatprep.subr.bf16.mxu1 %v905_v54  ;;  %339 = vmatprep.mubr.f32.mxu0 %v152_v58  ;;  %v235_v38 = vld [vmem:[%s1349_s1 + $0x268] sm:$0xff]  ;;  %v925_v41 = vpack.c.bf16 %v267_v34, %v266_v33  ;;  %v268_v42 = vld [vmem:[%s1349_s1 + $0x370] sm:$0xff]  ;;  %v269_v43 = vld [vmem:[%s1349_s1 + $0x378] sm:$0xff]  ;;  %v897_v45 = vpack.c.bf16 %v253_v40, %v252_v39 }
  0x2d   : > { %414 = vmatprep.mubr.f32.mxu1 %v154_v59  ;;  %340 = vmatmul.mubr.f32.gmra.mrb[2].mxu0 %v151_v60  ;;  %v895_v44 = vpack.c.bf16 %v235_v38, %v234_v37  ;;  %v236_v46 = vld [vmem:[%s1349_s1 + $0x270] sm:$0xff]  ;;  %v237_v47 = vld [vmem:[%s1349_s1 + $0x278] sm:$0xff]  ;;  %v929_v48 = vpack.c.bf16 %v269_v43, %v268_v42  ;;  %v148_v50 = vld [vmem:[%s1139_s11 + $0x20] sm:$0xff] }
  0x2e   : > { %876 = vmatpush3.bf16.msra.mxu0 %v875_v57  ;;  %415 = vmatmul.mubr.f32.gmra.mrb[2].mxu1 %v153_v0  ;;  %v899_v49 = vpack.c.bf16 %v237_v47, %v236_v46  ;;  %v156_v51 = vld [vmem:[%s1139_s11 + $0x60] sm:$0xff]  ;;  %v157_v52 = vld [vmem:[%s1139_s11 + $0x68] sm:$0xff]  ;;  %v155_v53 = vld [vmem:[%s1139_s11 + $0x58] sm:$0xff]  ;;  %s637_s11 = sshll.u32 %s1353_s10, 4 }
  0x2f   : > { %878 = vmatprep.subr.bf16.mxu0 %v877_v61  ;;  %908 = vmatpush3.bf16.msra.mxu1 %v905_v54  ;;  %s143_s13 = scalar_lea.vmem %s1350_s2, %s637_s11 }
  0x30   : > { %910 = vmatprep.subr.bf16.mxu1 %v909_v3  ;;  %484 = vmatprep.mubr.f32.mxu0 %v149_v6 }
  0x31   : > { %802 = vmatprep.mubr.f32.mxu1 %v150_v11 }
  0x32   : > { %880 = vmatpush3.bf16.msra.mxu0 %v879_v7 }
  0x33   : > { %882 = vmatprep.subr.bf16.mxu0 %v881_v8  ;;  %912 = vmatpush3.bf16.msra.mxu1 %v909_v3 }
  0x34   : > { %914 = vmatprep.subr.bf16.mxu1 %v913_v14 }
  0x36   : > { %884 = vmatpush3.bf16.msra.mxu0 %v883_v17 }
  0x37   : > { %886 = vmatprep.subr.bf16.mxu0 %v885_v18  ;;  %916 = vmatpush3.bf16.msra.mxu1 %v913_v14 }
  0x38   : > { %918 = vmatprep.subr.bf16.mxu1 %v917_v23 }
  0x3a   : > { %888 = vmatpush3.bf16.msra.mxu0 %v887_v26 }
  0x3b   : > { %890 = vmatprep.subr.bf16.mxu0 %v889_v27  ;;  %920 = vmatpush3.bf16.msra.mxu1 %v917_v23 }
  0x3c   : > { %922 = vmatprep.subr.bf16.mxu1 %v921_v32 }
  0x3e   : > { %892 = vmatpush3.bf16.msra.mxu0 %v891_v35 }
  0x3f   : > { %894 = vmatprep.subr.bf16.mxu0 %v893_v36  ;;  %924 = vmatpush3.bf16.msra.mxu1 %v921_v32 }
  0x40   : > { %926 = vmatprep.subr.bf16.mxu1 %v925_v41 }
  0x42   : > { %896 = vmatpush3.bf16.msra.mxu0 %v895_v44 }
  0x43   : > { %898 = vmatprep.subr.bf16.mxu0 %v897_v45  ;;  %928 = vmatpush3.bf16.msra.mxu1 %v925_v41 }
  0x44   : > { %930 = vmatprep.subr.bf16.mxu1 %v929_v48 }
  0x46   : > { %900 = vmatpush3.bf16.msra.mxu0 %v899_v49 }
  0x47   : > { %932 = vmatpush3.bf16.msra.mxu1 %v929_v48 }
  0x49   : > { %485 = vmatmul.mubr.f32.vlgmr.msra.gmra.mrb[4].mxu0 %v148_v50 }
  0x4a   : > { %489 = vmatprep.mubr.f32.mxu0 %v156_v51  ;;  %803 = vmatmul.mubr.f32.vlgmr.msra.gmra.mrb[4].mxu1 %v157_v52 }
  0x4d   : > { %490 = vmatmul.mubr.f32.gmra.mrb[6].mxu0 %v155_v53 }
  0xfc   : > { %v670_v54 = vpop.f32.mrb[0].mxu0 }
  0xfd   : > { %v708_v55 = vpop.f32.mrb[0].mxu1  ;;  %v671_v56 = vpop.f32.mrb[1].mxu0 }
  0xfe   : > { %v672_v57 = vadd.f32 %v671_v56, %v670_v54  ;;  %v709_v58 = vpop.f32.mrb[1].mxu1 }
  0xff   : > { %v710_v59 = vadd.f32 %v709_v58, %v708_v55 }
 0x100   : > { %v673_v60 = vpop.f32.mrb[2].mxu0 }
 0x101   : > { %v412_v61 = vadd.f32 %v710_v59, %v672_v57  ;;  %v711_v62 = vpop.f32.mrb[2].mxu1  ;;  %v674_v63 = vpop.f32.mrb[3].mxu0 }
 0x102   : > { %v675_v0 = vadd.f32 %v674_v63, %v673_v60  ;;  %v712_v1 = vpop.f32.mrb[3].mxu1 }
 0x103   : > { %v713_v2 = vadd.f32 %v712_v1, %v711_v62 }
 0x105   : > { %v417_v3 = vadd.f32 %v713_v2, %v675_v0 }
 0x11c   : > { %v746_v4 = vpop.f32.mrb[4].mxu0 }
 0x11d   : > { %v747_v5 = vpop.f32.mrb[5].mxu0  ;;  %v804_v6 = vpop.f32.mrb[4].mxu1 }
 0x11e   : > { %v748_v7 = vadd.f32 %v747_v5, %v746_v4  ;;  %v561_v8 = vpop.f32.mrb[5].mxu1 }
 0x120   : > { %v749_v9 = vpop.f32.mrb[6].mxu0  ;;  %v487_v10 = vadd.f32 %v748_v7, %v412_v61 }
 0x121   : > { %v750_v11 = vpop.f32.mrb[7].mxu0 }
 0x122   : > { %v751_v12 = vadd.f32 %v750_v11, %v749_v9  ;;  %v562_v13 = vadd.f32 %v561_v8, %v487_v10 }
 0x124   : > { %v492_v14 = vadd.f32 %v751_v12, %v417_v3  ;;  %570 = vst [vmem:[%s143_s13] sm:$0xff] %v562_v13 }
 0x126   : > { %v567_v15 = vadd.f32 %v804_v6, %v492_v14 }
 0x128   : > { %571 = vst [vmem:[%s143_s13 + $0x8] sm:$0xff] %v567_v15 }
 0x129 PF: > { %s12_s9 = sadd.s32 1, %s948_s9  }
 0x12a   : > { %p9_p4 = scmp.ge.s32.totalorder %s12_s9, 4  }
 0x12c   :  { %11 = sbr.rel (!%p9_p4) target bundleno = 1 (0x1), region = 58 }

</bundles_post_ra>
